<compile_context>
chip_gen: v7x
topology: tpu7x:2x2x1
jax: 0.10.0
libtpu: 0.0.40
codegen_flags: <defaults>
</compile_context>

<pallas_src>
import functools

import jax
import jax.numpy as jnp
import numpy as np
from jax import lax
from jax.experimental import pallas as pl
from jax.experimental.pallas import tpu as pltpu


# ---------------------------------------------------------------------------
# Hardware-aware sizing helpers (review: re-derive tile / VMEM per generation).
# ---------------------------------------------------------------------------
def _vmem_capacity_bytes():
    try:
        return int(pltpu.get_tpu_info().vmem_capacity_bytes)
    except Exception:
        return 64 * 1024 * 1024          # conservative (v7x-sized) fallback


def _vmem_limit_bytes(cap):
    # Leave ~24 MiB headroom for compiler-internal scratch; caps at ~100 MiB on
    # 128-MiB parts (v5e/v6e) and ~40 MiB on v7x (64 MiB / TensorCore).
    return int(min(100 * 1024 * 1024, max(32 * 1024 * 1024, cap - 24 * 1024 * 1024)))


def _choose_t_tile(T, pad, vmem_cap):
    """Largest divisor of T that is a multiple of 16 (then 8), <= target."""
    target = 512 if vmem_cap >= (96 << 20) else 256
    if T <= target:
        return T
    lo = max(pad, 8)
    for mult in (16, 8):
        tt = (target // mult) * mult
        while tt >= lo:
            if T % tt == 0:
                return tt
            tt -= mult
    return T                              # fallback: whole sequence per program


# ---------------------------------------------------------------------------
# Pass 1: PW1 (value/gate) -> GLU -> depthwise conv ('same') + BN partial sums.
# Grid: (B, T // Tt).  x block = full (1, T, C) per batch element (resident).
# ---------------------------------------------------------------------------
def _pass1_kernel(x_ref, w1v_ref, w1g_ref, b1v_ref, b1g_ref, dw_ref,
                  y_ref, ssum_ref, ssq_ref, *, kernel_size, t_tile):
    T, C = x_ref.shape[1], x_ref.shape[2]
    K = kernel_size
    pad = (K - 1) // 2
    Tt = t_tile

    t0 = pl.multiple_of(pl.program_id(1) * Tt, Tt)

    def pw1_glu(rows_f32):
        # In-kernel f32 -> bf16 cast (saves a standalone XLA cast pass).
        xb = rows_f32.astype(jnp.bfloat16)
        val = jnp.dot(xb, w1v_ref[...],
                      preferred_element_type=jnp.float32) + b1v_ref[...]
        gate = jnp.dot(xb, w1g_ref[...],
                       preferred_element_type=jnp.float32) + b1g_ref[...]
        return val * jax.nn.sigmoid(gate)                   # (rows, C) f32

    center = pw1_glu(x_ref[0, pl.ds(t0, Tt), :])            # (Tt, C)

    # Build the (Tt + 2*pad, C) GLU window in registers (no VMEM scratch):
    # halo rows outside [0, T) are exact zeros ('same' padding of the GLU
    # output, matching the PyTorch depthwise conv).
    if pad == 0:
        window = center
    elif Tt == T:
        zh = jnp.zeros((pad, C), jnp.float32)
        window = jnp.concatenate([zh, center, zh], axis=0)
    else:
        left = pw1_glu(x_ref[0, pl.ds(jnp.maximum(t0 - pad, 0), pad), :])
        left = jnp.where(t0 > 0, left, jnp.zeros_like(left))
        right = pw1_glu(x_ref[0, pl.ds(jnp.minimum(t0 + Tt, T - pad), pad), :])
        right = jnp.where(t0 + Tt < T, right, jnp.zeros_like(right))
        window = jnp.concatenate([left, center, right], axis=0)

    # Depthwise conv: K static taps; accumulator initialized from tap 0.
    dww = dw_ref[...]                                        # (K, C) f32
    acc = window[0:Tt, :] * dww[0:1, :]
    for k in range(1, K):
        acc = acc + window[k:k + Tt, :] * dww[k:k + 1, :]

    # bf16 intermediate (halves HBM traffic of the y round trip).
    y_ref[0] = acc.astype(y_ref.dtype)

    # Streamed single-pass BatchNorm statistics (computed from f32 acc).
    ssum_ref[...] = jnp.sum(acc, axis=0, keepdims=True).reshape(1, 1, 1, C)
    ssq_ref[...] = jnp.sum(acc * acc, axis=0, keepdims=True).reshape(1, 1, 1, C)


# ---------------------------------------------------------------------------
# Pass 2: BatchNorm affine -> Swish -> PW2 -> (fused) sequence mask.
# Grid over fixed row tiles of (B*T); tail block handled by cdiv + masking.
# ---------------------------------------------------------------------------
def _pass2_kernel(y_ref, m_ref, scale_ref, shift_ref, w2_ref, b2_ref, o_ref):
    yn = y_ref[...].astype(jnp.float32) * scale_ref[...] + shift_ref[...]
    s = yn * jax.nn.sigmoid(yn)                              # Swish
    o = jnp.dot(s.astype(w2_ref.dtype), w2_ref[...],
                preferred_element_type=jnp.float32) + b2_ref[...]
    o = jnp.where(m_ref[...] > 0.0, o, jnp.zeros_like(o))    # fused mask
    o_ref[...] = o.astype(o_ref.dtype)


# ---------------------------------------------------------------------------
# Wrapper.
# ---------------------------------------------------------------------------
def conv_module_forward(x, params, mask=None, t_tile=None):
    """x: (B, T, C) float32, mask: optional (B, T) bool.  Returns (B, T, C),
    matching ConvModule.forward (training-mode BN batch stats, Dropout = id)."""
    B, T, C = x.shape
    K = params["dw"].shape[1]
    assert K % 2 == 1, "kernel_size must be odd for 'same' padding"
    pad = (K - 1) // 2

    vmem_cap = _vmem_capacity_bytes()
    vmem_limit = _vmem_limit_bytes(vmem_cap)

    if t_tile is None:
        t_tile = _choose_t_tile(T, pad, vmem_cap)
    assert T % t_tile == 0, "t_tile must divide T"
    assert t_tile == T or (t_tile % 8 == 0 and t_tile >= pad), \
        "t_tile must be a multiple of 8 and >= (K-1)//2 unless it equals T"
    nT = T // t_tile

    # --- parameter prep (once, in the wrapper) ------------------------------
    # TODO(synk): when C % 128 == 0, the value/gate matmuls could be fused into
    # a single (C, 2C) weight with a lane-aligned slice of the result.
    w1 = params["w1"]                                        # (2C, C) torch layout
    w1v = w1[:C, :].T.astype(jnp.bfloat16)                   # (C, C) value branch
    w1g = w1[C:, :].T.astype(jnp.bfloat16)                   # (C, C) gate branch
    b1v = params["b1"][:C].reshape(1, C).astype(jnp.float32)
    b1g = params["b1"][C:].reshape(1, C).astype(jnp.float32)
    dw = params["dw"].T.astype(jnp.float32)                  # (K, C)
    w2 = params["w2"].T.astype(jnp.bfloat16)                 # (C, C)
    b2 = params["b2"].reshape(1, C).astype(jnp.float32)
    x32 = x.astype(jnp.float32)                              # cast to bf16 in-kernel

    # --- Pass 1 --------------------------------------------------------------
    kernel1 = functools.partial(_pass1_kernel, kernel_size=K, t_tile=t_tile)
    y, ssum, ssq = pl.pallas_call(
        kernel1,
        out_shape=(jax.ShapeDtypeStruct((B, T, C), jnp.bfloat16),
                   jax.ShapeDtypeStruct((B, nT, 1, C), jnp.float32),
                   jax.ShapeDtypeStruct((B, nT, 1, C), jnp.float32)),
        grid=(B, nT),
        in_specs=[
            pl.BlockSpec((1, T, C), lambda b, t: (b, 0, 0)),   # x (resident per b)
            pl.BlockSpec((C, C), lambda b, t: (0, 0)),         # w1 value (resident)
            pl.BlockSpec((C, C), lambda b, t: (0, 0)),         # w1 gate  (resident)
            pl.BlockSpec((1, C), lambda b, t: (0, 0)),          # b1 value
            pl.BlockSpec((1, C), lambda b, t: (0, 0)),          # b1 gate
            pl.BlockSpec((K, C), lambda b, t: (0, 0)),           # depthwise weights
        ],
        out_specs=[
            pl.BlockSpec((1, t_tile, C), lambda b, t: (b, t, 0)),    # y tile (bf16)
            pl.BlockSpec((1, 1, 1, C), lambda b, t: (b, t, 0, 0)),   # per-tile sum
            pl.BlockSpec((1, 1, 1, C), lambda b, t: (b, t, 0, 0)),   # per-tile sumsq
        ],
        compiler_params=pltpu.CompilerParams(
            dimension_semantics=("parallel", "parallel"),
            vmem_limit_bytes=vmem_limit),
    )(x32, w1v, w1g, b1v, b1g, dw)

    # --- BatchNorm affine from streamed statistics (tiny, plain JAX) --------
    n = B * T
    total_sum = jnp.sum(ssum, axis=(0, 1, 2))                # (C,)
    total_sq = jnp.sum(ssq, axis=(0, 1, 2))                  # (C,)
    mean = total_sum / n
    var = jnp.maximum(total_sq / n - mean * mean, 0.0)       # single-pass variance
    inv = lax.rsqrt(var + 1e-5)
    scale = (params["gamma"] * inv).reshape(1, C).astype(jnp.float32)
    shift = (params["beta"] - params["gamma"] * mean * inv
             ).reshape(1, C).astype(jnp.float32)

    # --- Pass 2: normalize -> Swish -> PW2 -> mask ----------------------------
    BT = B * T
    tm = 512 if BT > 512 else BT                             # multiple of 8 or full
    y2 = y.reshape(BT, C)
    if mask is None:
        row_mask = jnp.ones((BT, 1), jnp.float32)
    else:
        row_mask = mask.reshape(BT, 1).astype(jnp.float32)

    out2 = pl.pallas_call(
        _pass2_kernel,
        out_shape=jax.ShapeDtypeStruct((BT, C), x.dtype),
        grid=(pl.cdiv(BT, tm),),
        in_specs=[
            pl.BlockSpec((tm, C), lambda i: (i, 0)),          # y tile (bf16)
            pl.BlockSpec((tm, 1), lambda i: (i, 0)),          # per-row mask
            pl.BlockSpec((1, C), lambda i: (0, 0)),           # BN scale (resident)
            pl.BlockSpec((1, C), lambda i: (0, 0)),           # BN shift (resident)
            pl.BlockSpec((C, C), lambda i: (0, 0)),           # w2 (resident)
            pl.BlockSpec((1, C), lambda i: (0, 0)),           # b2
        ],
        out_specs=pl.BlockSpec((tm, C), lambda i: (i, 0)),
        compiler_params=pltpu.CompilerParams(
            dimension_semantics=("parallel",),
            vmem_limit_bytes=vmem_limit),
    )(y2, row_mask, scale, shift, w2, b2)
    return out2.reshape(B, T, C)


# ---------------------------------------------------------------------------
# Parameters + pure-JAX reference.
# ---------------------------------------------------------------------------
def init_params(key, C, K):
    """Deterministic parameter init matching the PyTorch layer shapes."""
    ks = jax.random.split(key, 5)
    s1 = 1.0 / np.sqrt(C)
    sdw = 1.0 / np.sqrt(K)
    return dict(
        w1=jax.random.uniform(ks[0], (2 * C, C), jnp.float32, -s1, s1),
        b1=jax.random.uniform(ks[1], (2 * C,), jnp.float32, -s1, s1),
        dw=jax.random.uniform(ks[2], (C, K), jnp.float32, -sdw, sdw),
        gamma=jnp.ones((C,), jnp.float32),
        beta=jnp.zeros((C,), jnp.float32),
        w2=jax.random.uniform(ks[3], (C, C), jnp.float32, -s1, s1),
        b2=jax.random.uniform(ks[4], (C,), jnp.float32, -s1, s1),
    )


def ref_forward(x, p):
    """Pure-JAX reference mirroring the PyTorch ConvModule forward (NCT inside).
    Matmul inputs are cast to bfloat16 (f32 accumulation) to mirror the kernel's
    MXU precision; everything else is float32."""
    B, T, C = x.shape
    xt = jnp.transpose(x, (0, 2, 1)).astype(jnp.bfloat16)    # (B, C, T)
    h = jnp.einsum("oc,bct->bot", p["w1"].astype(jnp.bfloat16), xt,
                   preferred_element_type=jnp.float32) + p["b1"][None, :, None]
    a, g = h[:, :C, :], h[:, C:, :]
    glu = a * jax.nn.sigmoid(g)
    y = lax.conv_general_dilated(
        glu, p["dw"][:, None, :], window_strides=(1,), padding="SAME",
        feature_group_count=C, dimension_numbers=("NCH", "OIH", "NCH"))
    mean = jnp.mean(y, axis=(0, 2), keepdims=True)
    var = jnp.mean((y - mean) ** 2, axis=(0, 2), keepdims=True)
    yn = (y - mean) * lax.rsqrt(var + 1e-5)
    yn = yn * p["gamma"][None, :, None] + p["beta"][None, :, None]
    s = yn * jax.nn.sigmoid(yn)
    o = jnp.einsum("oc,bct->bot", p["w2"].astype(jnp.bfloat16),
                   s.astype(jnp.bfloat16),
                   preferred_element_type=jnp.float32) + p["b2"][None, :, None]
    return jnp.transpose(o, (0, 2, 1))


if __name__ == "__main__":
    B, T, C, K = 2, 32, 8, 7          # kernel_size must be odd ('same' padding)
    key = jax.random.PRNGKey(0)
    kx, kp = jax.random.split(key)
    x = jax.random.normal(kx, (B, T, C), jnp.float32)
    params = init_params(kp, C, K)

    # t_tile=16 forces the multi-tile (halo) path even at this small T.
    out = jax.block_until_ready(conv_module_forward(x, params, t_tile=16))
    ref = jax.block_until_ready(ref_forward(x, params))
    np.testing.assert_allclose(np.asarray(out), np.asarray(ref),
                               rtol=2e-2, atol=2e-2)
    print("KERNEL_OK")
</pallas_src>

<mosaic_0001>
module attributes {stable_mosaic.version = 11 : i64} {
  func.func @_pass1_kernel(%arg0: i32, %arg1: i32, %arg2: memref<1x32x8xf32, #tpu.memory_space<vmem>>, %arg3: memref<8x8xbf16, #tpu.memory_space<vmem>>, %arg4: memref<8x8xbf16, #tpu.memory_space<vmem>>, %arg5: memref<1x8xf32, #tpu.memory_space<vmem>>, %arg6: memref<1x8xf32, #tpu.memory_space<vmem>>, %arg7: memref<7x8xf32, #tpu.memory_space<vmem>>, %arg8: memref<1x16x8xbf16, #tpu.memory_space<vmem>>, %arg9: memref<1x1x1x8xf32, #tpu.memory_space<vmem>>, %arg10: memref<1x1x1x8xf32, #tpu.memory_space<vmem>>) attributes {dimension_semantics = [#tpu.dimension_semantics<parallel>, #tpu.dimension_semantics<parallel>], iteration_bounds = array<i64: 2, 2>, scalar_prefetch = 0 : i64, scratch_operands = 0 : i64, tpu.core_type = #tpu.core_type<tc>, window_params = [{transform_indices = @transform_0, window_bounds = array<i64: 1, 32, 8>}, {pipeline_mode = #tpu.pipeline_mode<synchronous>, transform_indices = @transform_1, window_bounds = array<i64: 8, 8>}, {pipeline_mode = #tpu.pipeline_mode<synchronous>, transform_indices = @transform_2, window_bounds = array<i64: 8, 8>}, {pipeline_mode = #tpu.pipeline_mode<synchronous>, transform_indices = @transform_3, window_bounds = array<i64: 1, 8>}, {pipeline_mode = #tpu.pipeline_mode<synchronous>, transform_indices = @transform_4, window_bounds = array<i64: 1, 8>}, {pipeline_mode = #tpu.pipeline_mode<synchronous>, transform_indices = @transform_5, window_bounds = array<i64: 7, 8>}, {transform_indices = @transform_6, window_bounds = array<i64: 1, 16, 8>}, {transform_indices = @transform_7, window_bounds = array<i64: 1, 1, 1, 8>}, {transform_indices = @transform_8, window_bounds = array<i64: 1, 1, 1, 8>}]} {
    %c16_i32 = arith.constant 16 : i32
    %0 = arith.muli %arg1, %c16_i32 : i32
    %1 = tpu.assume_multiple %0, 16 : i32
    %c0 = arith.constant 0 : index
    %2 = arith.index_cast %1 : i32 to index
    %c0_0 = arith.constant 0 : index
    %3 = vector.load %arg2[%c0, %2, %c0_0] : memref<1x32x8xf32, #tpu.memory_space<vmem>>, vector<1x16x8xf32>
    %4 = vector.shape_cast %3 : vector<1x16x8xf32> to vector<16x8xf32>
    %5 = arith.truncf %4 : vector<16x8xf32> to vector<16x8xbf16>
    %c0_1 = arith.constant 0 : index
    %c0_2 = arith.constant 0 : index
    %6 = vector.load %arg3[%c0_1, %c0_2] : memref<8x8xbf16, #tpu.memory_space<vmem>>, vector<8x8xbf16>
    %cst = arith.constant dense<0.000000e+00> : vector<16x8xf32>
    %7 = tpu.matmul %5, %6, %cst {dimension_numbers = #tpu.dot_dimension_numbers<[1], [0], [0], [1], [0, 0, 1, 1], [], []>} : vector<16x8xbf16>, vector<8x8xbf16>, vector<16x8xf32> -> vector<16x8xf32>
    %c0_3 = arith.constant 0 : index
    %c0_4 = arith.constant 0 : index
    %8 = vector.load %arg5[%c0_3, %c0_4] : memref<1x8xf32, #tpu.memory_space<vmem>>, vector<1x8xf32>
    %9 = vector.broadcast %8 : vector<1x8xf32> to vector<16x8xf32>
    %10 = arith.addf %7, %9 : vector<16x8xf32>
    %c0_5 = arith.constant 0 : index
    %c0_6 = arith.constant 0 : index
    %11 = vector.load %arg4[%c0_5, %c0_6] : memref<8x8xbf16, #tpu.memory_space<vmem>>, vector<8x8xbf16>
    %cst_7 = arith.constant dense<0.000000e+00> : vector<16x8xf32>
    %12 = tpu.matmul %5, %11, %cst_7 {dimension_numbers = #tpu.dot_dimension_numbers<[1], [0], [0], [1], [0, 0, 1, 1], [], []>} : vector<16x8xbf16>, vector<8x8xbf16>, vector<16x8xf32> -> vector<16x8xf32>
    %c0_8 = arith.constant 0 : index
    %c0_9 = arith.constant 0 : index
    %13 = vector.load %arg6[%c0_8, %c0_9] : memref<1x8xf32, #tpu.memory_space<vmem>>, vector<1x8xf32>
    %14 = vector.broadcast %13 : vector<1x8xf32> to vector<16x8xf32>
    %15 = arith.addf %12, %14 : vector<16x8xf32>
    %16 = arith.negf %15 : vector<16x8xf32>
    %17 = math.exp %16 : vector<16x8xf32>
    %cst_10 = arith.constant 1.000000e+00 : f32
    %18 = vector.broadcast %cst_10 : f32 to vector<16x8xf32>
    %19 = arith.addf %18, %17 : vector<16x8xf32>
    %20 = arith.divf %18, %19 : vector<16x8xf32>
    %21 = arith.mulf %10, %20 : vector<16x8xf32>
    %c3_i32 = arith.constant 3 : i32
    %22 = arith.subi %1, %c3_i32 : i32
    %c0_i32 = arith.constant 0 : i32
    %23 = arith.maxsi %22, %c0_i32 : i32
    %c0_11 = arith.constant 0 : index
    %24 = arith.index_cast %23 : i32 to index
    %c0_12 = arith.constant 0 : index
    %25 = vector.load %arg2[%c0_11, %24, %c0_12] : memref<1x32x8xf32, #tpu.memory_space<vmem>>, vector<1x3x8xf32>
    %26 = vector.shape_cast %25 : vector<1x3x8xf32> to vector<3x8xf32>
    %27 = arith.truncf %26 : vector<3x8xf32> to vector<3x8xbf16>
    %c0_13 = arith.constant 0 : index
    %c0_14 = arith.constant 0 : index
    %28 = vector.load %arg3[%c0_13, %c0_14] : memref<8x8xbf16, #tpu.memory_space<vmem>>, vector<8x8xbf16>
    %cst_15 = arith.constant dense<0.000000e+00> : vector<3x8xf32>
    %29 = tpu.matmul %27, %28, %cst_15 {dimension_numbers = #tpu.dot_dimension_numbers<[1], [0], [0], [1], [0, 0, 1, 1], [], []>} : vector<3x8xbf16>, vector<8x8xbf16>, vector<3x8xf32> -> vector<3x8xf32>
    %c0_16 = arith.constant 0 : index
    %c0_17 = arith.constant 0 : index
    %30 = vector.load %arg5[%c0_16, %c0_17] : memref<1x8xf32, #tpu.memory_space<vmem>>, vector<1x8xf32>
    %31 = vector.broadcast %30 : vector<1x8xf32> to vector<3x8xf32>
    %32 = arith.addf %29, %31 : vector<3x8xf32>
    %c0_18 = arith.constant 0 : index
    %c0_19 = arith.constant 0 : index
    %33 = vector.load %arg4[%c0_18, %c0_19] : memref<8x8xbf16, #tpu.memory_space<vmem>>, vector<8x8xbf16>
    %cst_20 = arith.constant dense<0.000000e+00> : vector<3x8xf32>
    %34 = tpu.matmul %27, %33, %cst_20 {dimension_numbers = #tpu.dot_dimension_numbers<[1], [0], [0], [1], [0, 0, 1, 1], [], []>} : vector<3x8xbf16>, vector<8x8xbf16>, vector<3x8xf32> -> vector<3x8xf32>
    %c0_21 = arith.constant 0 : index
    %c0_22 = arith.constant 0 : index
    %35 = vector.load %arg6[%c0_21, %c0_22] : memref<1x8xf32, #tpu.memory_space<vmem>>, vector<1x8xf32>
    %36 = vector.broadcast %35 : vector<1x8xf32> to vector<3x8xf32>
    %37 = arith.addf %34, %36 : vector<3x8xf32>
    %38 = arith.negf %37 : vector<3x8xf32>
    %39 = math.exp %38 : vector<3x8xf32>
    %cst_23 = arith.constant 1.000000e+00 : f32
    %40 = vector.broadcast %cst_23 : f32 to vector<3x8xf32>
    %41 = arith.addf %40, %39 : vector<3x8xf32>
    %42 = arith.divf %40, %41 : vector<3x8xf32>
    %43 = arith.mulf %32, %42 : vector<3x8xf32>
    %c0_i32_24 = arith.constant 0 : i32
    %44 = arith.cmpi sgt, %1, %c0_i32_24 : i32
    %cst_25 = arith.constant 0.000000e+00 : f32
    %45 = vector.broadcast %cst_25 : f32 to vector<3x8xf32>
    %46 = arith.select %44, %43, %45 : vector<3x8xf32>
    %c16_i32_26 = arith.constant 16 : i32
    %47 = arith.addi %1, %c16_i32_26 : i32
    %c29_i32 = arith.constant 29 : i32
    %48 = arith.minsi %47, %c29_i32 : i32
    %c0_27 = arith.constant 0 : index
    %49 = arith.index_cast %48 : i32 to index
    %c0_28 = arith.constant 0 : index
    %50 = vector.load %arg2[%c0_27, %49, %c0_28] : memref<1x32x8xf32, #tpu.memory_space<vmem>>, vector<1x3x8xf32>
    %51 = vector.shape_cast %50 : vector<1x3x8xf32> to vector<3x8xf32>
    %52 = arith.truncf %51 : vector<3x8xf32> to vector<3x8xbf16>
    %c0_29 = arith.constant 0 : index
    %c0_30 = arith.constant 0 : index
    %53 = vector.load %arg3[%c0_29, %c0_30] : memref<8x8xbf16, #tpu.memory_space<vmem>>, vector<8x8xbf16>
    %cst_31 = arith.constant dense<0.000000e+00> : vector<3x8xf32>
    %54 = tpu.matmul %52, %53, %cst_31 {dimension_numbers = #tpu.dot_dimension_numbers<[1], [0], [0], [1], [0, 0, 1, 1], [], []>} : vector<3x8xbf16>, vector<8x8xbf16>, vector<3x8xf32> -> vector<3x8xf32>
    %c0_32 = arith.constant 0 : index
    %c0_33 = arith.constant 0 : index
    %55 = vector.load %arg5[%c0_32, %c0_33] : memref<1x8xf32, #tpu.memory_space<vmem>>, vector<1x8xf32>
    %56 = vector.broadcast %55 : vector<1x8xf32> to vector<3x8xf32>
    %57 = arith.addf %54, %56 : vector<3x8xf32>
    %c0_34 = arith.constant 0 : index
    %c0_35 = arith.constant 0 : index
    %58 = vector.load %arg4[%c0_34, %c0_35] : memref<8x8xbf16, #tpu.memory_space<vmem>>, vector<8x8xbf16>
    %cst_36 = arith.constant dense<0.000000e+00> : vector<3x8xf32>
    %59 = tpu.matmul %52, %58, %cst_36 {dimension_numbers = #tpu.dot_dimension_numbers<[1], [0], [0], [1], [0, 0, 1, 1], [], []>} : vector<3x8xbf16>, vector<8x8xbf16>, vector<3x8xf32> -> vector<3x8xf32>
    %c0_37 = arith.constant 0 : index
    %c0_38 = arith.constant 0 : index
    %60 = vector.load %arg6[%c0_37, %c0_38] : memref<1x8xf32, #tpu.memory_space<vmem>>, vector<1x8xf32>
    %61 = vector.broadcast %60 : vector<1x8xf32> to vector<3x8xf32>
    %62 = arith.addf %59, %61 : vector<3x8xf32>
    %63 = arith.negf %62 : vector<3x8xf32>
    %64 = math.exp %63 : vector<3x8xf32>
    %cst_39 = arith.constant 1.000000e+00 : f32
    %65 = vector.broadcast %cst_39 : f32 to vector<3x8xf32>
    %66 = arith.addf %65, %64 : vector<3x8xf32>
    %67 = arith.divf %65, %66 : vector<3x8xf32>
    %68 = arith.mulf %57, %67 : vector<3x8xf32>
    %c16_i32_40 = arith.constant 16 : i32
    %69 = arith.addi %1, %c16_i32_40 : i32
    %c32_i32 = arith.constant 32 : i32
    %70 = arith.cmpi slt, %69, %c32_i32 : i32
    %cst_41 = arith.constant 0.000000e+00 : f32
    %71 = vector.broadcast %cst_41 : f32 to vector<3x8xf32>
    %72 = arith.select %70, %68, %71 : vector<3x8xf32>
    %73 = tpu.concatenate %46, %21, %72 in 0 : vector<3x8xf32>, vector<16x8xf32>, vector<3x8xf32> -> vector<22x8xf32>
    %c0_42 = arith.constant 0 : index
    %c0_43 = arith.constant 0 : index
    %74 = vector.load %arg7[%c0_42, %c0_43] : memref<7x8xf32, #tpu.memory_space<vmem>>, vector<7x8xf32>
    %75 = vector.extract_strided_slice %73 {offsets = [0, 0], sizes = [16, 8], strides = [1, 1]} : vector<22x8xf32> to vector<16x8xf32>
    %76 = vector.extract_strided_slice %74 {offsets = [0, 0], sizes = [1, 8], strides = [1, 1]} : vector<7x8xf32> to vector<1x8xf32>
    %77 = vector.broadcast %76 : vector<1x8xf32> to vector<16x8xf32>
    %78 = arith.mulf %75, %77 : vector<16x8xf32>
    %79 = vector.extract_strided_slice %73 {offsets = [1, 0], sizes = [16, 8], strides = [1, 1]} : vector<22x8xf32> to vector<16x8xf32>
    %80 = vector.extract_strided_slice %74 {offsets = [1, 0], sizes = [1, 8], strides = [1, 1]} : vector<7x8xf32> to vector<1x8xf32>
    %81 = vector.broadcast %80 : vector<1x8xf32> to vector<16x8xf32>
    %82 = arith.mulf %79, %81 : vector<16x8xf32>
    %83 = arith.addf %78, %82 : vector<16x8xf32>
    %84 = vector.extract_strided_slice %73 {offsets = [2, 0], sizes = [16, 8], strides = [1, 1]} : vector<22x8xf32> to vector<16x8xf32>
    %85 = vector.extract_strided_slice %74 {offsets = [2, 0], sizes = [1, 8], strides = [1, 1]} : vector<7x8xf32> to vector<1x8xf32>
    %86 = vector.broadcast %85 : vector<1x8xf32> to vector<16x8xf32>
    %87 = arith.mulf %84, %86 : vector<16x8xf32>
    %88 = arith.addf %83, %87 : vector<16x8xf32>
    %89 = vector.extract_strided_slice %73 {offsets = [3, 0], sizes = [16, 8], strides = [1, 1]} : vector<22x8xf32> to vector<16x8xf32>
    %90 = vector.extract_strided_slice %74 {offsets = [3, 0], sizes = [1, 8], strides = [1, 1]} : vector<7x8xf32> to vector<1x8xf32>
    %91 = vector.broadcast %90 : vector<1x8xf32> to vector<16x8xf32>
    %92 = arith.mulf %89, %91 : vector<16x8xf32>
    %93 = arith.addf %88, %92 : vector<16x8xf32>
    %94 = vector.extract_strided_slice %73 {offsets = [4, 0], sizes = [16, 8], strides = [1, 1]} : vector<22x8xf32> to vector<16x8xf32>
    %95 = vector.extract_strided_slice %74 {offsets = [4, 0], sizes = [1, 8], strides = [1, 1]} : vector<7x8xf32> to vector<1x8xf32>
    %96 = vector.broadcast %95 : vector<1x8xf32> to vector<16x8xf32>
    %97 = arith.mulf %94, %96 : vector<16x8xf32>
    %98 = arith.addf %93, %97 : vector<16x8xf32>
    %99 = vector.extract_strided_slice %73 {offsets = [5, 0], sizes = [16, 8], strides = [1, 1]} : vector<22x8xf32> to vector<16x8xf32>
    %100 = vector.extract_strided_slice %74 {offsets = [5, 0], sizes = [1, 8], strides = [1, 1]} : vector<7x8xf32> to vector<1x8xf32>
    %101 = vector.broadcast %100 : vector<1x8xf32> to vector<16x8xf32>
    %102 = arith.mulf %99, %101 : vector<16x8xf32>
    %103 = arith.addf %98, %102 : vector<16x8xf32>
    %104 = vector.extract_strided_slice %73 {offsets = [6, 0], sizes = [16, 8], strides = [1, 1]} : vector<22x8xf32> to vector<16x8xf32>
    %105 = vector.extract_strided_slice %74 {offsets = [6, 0], sizes = [1, 8], strides = [1, 1]} : vector<7x8xf32> to vector<1x8xf32>
    %106 = vector.broadcast %105 : vector<1x8xf32> to vector<16x8xf32>
    %107 = arith.mulf %104, %106 : vector<16x8xf32>
    %108 = arith.addf %103, %107 : vector<16x8xf32>
    %109 = arith.truncf %108 : vector<16x8xf32> to vector<16x8xbf16>
    %c0_44 = arith.constant 0 : index
    %c0_45 = arith.constant 0 : index
    %c0_46 = arith.constant 0 : index
    %110 = vector.load %arg8[%c0_44, %c0_45, %c0_46] : memref<1x16x8xbf16, #tpu.memory_space<vmem>>, vector<1x16x8xbf16>
    %111 = vector.shape_cast %110 : vector<1x16x8xbf16> to vector<16x8xbf16>
    %112 = vector.shape_cast %109 : vector<16x8xbf16> to vector<1x16x8xbf16>
    tpu.vector_store %arg8[%c0_44, %c0_45, %c0_46], %112 {strides = array<i32>} : memref<1x16x8xbf16, #tpu.memory_space<vmem>>, vector<1x16x8xbf16>,
    %cst_47 = arith.constant dense<0.000000e+00> : vector<8xf32>
    %113 = vector.multi_reduction <add>, %108, %cst_47 [0] : vector<16x8xf32> to vector<8xf32>
    %114 = vector.shape_cast %113 : vector<8xf32> to vector<1x8xf32>
    %115 = vector.shape_cast %114 : vector<1x8xf32> to vector<1x1x1x8xf32>
    %c0_48 = arith.constant 0 : index
    %c0_49 = arith.constant 0 : index
    %c0_50 = arith.constant 0 : index
    %c0_51 = arith.constant 0 : index
    %116 = vector.load %arg9[%c0_48, %c0_49, %c0_50, %c0_51] : memref<1x1x1x8xf32, #tpu.memory_space<vmem>>, vector<1x1x1x8xf32>
    tpu.vector_store %arg9[%c0_48, %c0_49, %c0_50, %c0_51], %115 {strides = array<i32>} : memref<1x1x1x8xf32, #tpu.memory_space<vmem>>, vector<1x1x1x8xf32>,
    %117 = arith.mulf %108, %108 : vector<16x8xf32>
    %cst_52 = arith.constant dense<0.000000e+00> : vector<8xf32>
    %118 = vector.multi_reduction <add>, %117, %cst_52 [0] : vector<16x8xf32> to vector<8xf32>
    %119 = vector.shape_cast %118 : vector<8xf32> to vector<1x8xf32>
    %120 = vector.shape_cast %119 : vector<1x8xf32> to vector<1x1x1x8xf32>
    %c0_53 = arith.constant 0 : index
    %c0_54 = arith.constant 0 : index
    %c0_55 = arith.constant 0 : index
    %c0_56 = arith.constant 0 : index
    %121 = vector.load %arg10[%c0_53, %c0_54, %c0_55, %c0_56] : memref<1x1x1x8xf32, #tpu.memory_space<vmem>>, vector<1x1x1x8xf32>
    tpu.vector_store %arg10[%c0_53, %c0_54, %c0_55, %c0_56], %120 {strides = array<i32>} : memref<1x1x1x8xf32, #tpu.memory_space<vmem>>, vector<1x1x1x8xf32>,
    return
  }
  func.func @transform_0(%arg0: i32, %arg1: i32) -> (i32, i32, i32) {
    %c0_i32 = arith.constant 0 : i32
    %c0_i32_0 = arith.constant 0 : i32
    %c0_i32_1 = arith.constant 0 : i32
    return %arg0, %c0_i32, %c0_i32_0 : i32, i32, i32
  }
  func.func @transform_1(%arg0: i32, %arg1: i32) -> (i32, i32) {
    %c0_i32 = arith.constant 0 : i32
    %c0_i32_0 = arith.constant 0 : i32
    %c0_i32_1 = arith.constant 0 : i32
    return %c0_i32, %c0_i32_0 : i32, i32
  }
  func.func @transform_2(%arg0: i32, %arg1: i32) -> (i32, i32) {
    %c0_i32 = arith.constant 0 : i32
    %c0_i32_0 = arith.constant 0 : i32
    %c0_i32_1 = arith.constant 0 : i32
    return %c0_i32, %c0_i32_0 : i32, i32
  }
  func.func @transform_3(%arg0: i32, %arg1: i32) -> (i32, i32) {
    %c0_i32 = arith.constant 0 : i32
    %c0_i32_0 = arith.constant 0 : i32
    %c0_i32_1 = arith.constant 0 : i32
    return %c0_i32, %c0_i32_0 : i32, i32
  }
  func.func @transform_4(%arg0: i32, %arg1: i32) -> (i32, i32) {
    %c0_i32 = arith.constant 0 : i32
    %c0_i32_0 = arith.constant 0 : i32
    %c0_i32_1 = arith.constant 0 : i32
    return %c0_i32, %c0_i32_0 : i32, i32
  }
  func.func @transform_5(%arg0: i32, %arg1: i32) -> (i32, i32) {
    %c0_i32 = arith.constant 0 : i32
    %c0_i32_0 = arith.constant 0 : i32
    %c0_i32_1 = arith.constant 0 : i32
    return %c0_i32, %c0_i32_0 : i32, i32
  }
  func.func @transform_6(%arg0: i32, %arg1: i32) -> (i32, i32, i32) {
    %c0_i32 = arith.constant 0 : i32
    %c0_i32_0 = arith.constant 0 : i32
    return %arg0, %arg1, %c0_i32 : i32, i32, i32
  }
  func.func @transform_7(%arg0: i32, %arg1: i32) -> (i32, i32, i32, i32) {
    %c0_i32 = arith.constant 0 : i32
    %c0_i32_0 = arith.constant 0 : i32
    %c0_i32_1 = arith.constant 0 : i32
    return %arg0, %arg1, %c0_i32, %c0_i32_0 : i32, i32, i32, i32
  }
  func.func @transform_8(%arg0: i32, %arg1: i32) -> (i32, i32, i32, i32) {
    %c0_i32 = arith.constant 0 : i32
    %c0_i32_0 = arith.constant 0 : i32
    %c0_i32_1 = arith.constant 0 : i32
    return %arg0, %arg1, %c0_i32, %c0_i32_0 : i32, i32, i32, i32
  }
}

</mosaic_0001>

<bundles_post_ra>
// kernel: tpu_custom_call.1
= control target key start
LH: loop header
LB: loop body
LE: loop exit
PB: predicated region body
PF: predicated region fallthrough
CT: control target
= control target key end

     0   :  { %s1734_s0 = inlined_call_operand.vmem [shape: f32[2,32,8], index: 0, kind: input, shape index: {}]   ;;  %s1735_s1 = inlined_call_operand.vmem [shape: bf16[8,8], index: 1, kind: input, shape index: {}]   ;;  %s1736_s2 = inlined_call_operand.vmem [shape: bf16[8,8], index: 2, kind: input, shape index: {}]   ;;  %s1737_s3 = inlined_call_operand.vmem [shape: f32[1,8], index: 3, kind: input, shape index: {}]   ;;  %s1738_s4 = inlined_call_operand.vmem [shape: f32[1,8], index: 4, kind: input, shape index: {}]   ;;  %s1739_s5 = inlined_call_operand.vmem [shape: f32[7,8], index: 5, kind: input, shape index: {}]   ;;  %s1740_s6 = inlined_call_operand.vmem [shape: bf16[2,32,8], index: 6, kind: output, shape index: {0}]   ;;  %s1741_s7 = inlined_call_operand.hbm [shape: f32[2,2,1,8], index: 7, kind: output, shape index: {1}]   ;;  %s1742_s8 = inlined_call_operand.hbm [shape: f32[2,2,1,8], index: 8, kind: output, shape index: {2}]  }
   0x1   :  { %1744 = sst [smem:[#allocation8_spill]] %s1734_s0 }
   0x2   :  { %1745 = sst [smem:[#allocation9_spill]] %s1735_s1 }
   0x3   :  { %1746 = sst [smem:[#allocation10_spill]] %s1736_s2 }
   0x4   :  { %14 = vsyncpa [#allocation3], 0 }
   0x5   :  { %16 = vsyncpa [#allocation3 + $0x1], 0 }
   0x6   :  { %17 = vsyncpa [#allocation5], 0 }
   0x7   :  { %19 = vsyncpa [#allocation5 + $0x1], 0  ;;  %s1396_s27 = smov 0   ;;  %s1398_s28 = smov 0  }
   0x8   :  { %s1400_s29 = smov 0   ;;  %s1402_s30 = smov 0  }
   0x9   :  { %s1404_s9 = smov 0   ;;  %s1406_s10 = smov 0  }
   0xa   :  { %s1408_s11 = smov 0   ;;  %s1410_s12 = smov 0  }
   0xb LB: > { %s1042_s13 = sadd.s32 4294967295, %s1345_s12   ;;  %s1043_s14 = sadd.s32 4294967294, %s1345_s12   ;;  %s1345_s12 = sphi %s1410_s12, %s25_s12   ;;  %s1341_s11 = sphi %s1408_s11, %s1764_s11   ;;  %s1337_s10 = sphi %s1406_s10, %s1763_s10   ;;  %s1333_s9 = sphi %s1404_s9, %s1762_s9   ;;  %s1329_s30 = sphi %s1402_s30, %s1761_s30   ;;  %s1325_s29 = sphi %s1400_s29, %s1760_s29   ;;  %s1321_s28 = sphi %s1398_s28, %s1759_s28   ;;  %s1317_s27 = sphi %s1396_s27, %s1758_s27  }
   0xc   : > { %s34_s15 = sadd.s32 1, %s1337_s10  ;;  %s37_s16 = sadd.s32 1, %s1341_s11 }
   0xd   : > { %p35_p0 = scmp.ge.s32.totalorder %s34_s15, 2  ;;  %p215_p1 = scmp.ne.s32.totalorder %s1325_s29, %s1321_s28 }
   0xe   : > { %p216_p2 = scmp.eq.s32.totalorder %s1042_s13, 3  ;;  %p221_p5 = scmp.ne.s32.totalorder %s1321_s28, %s1317_s27 }
   0xf   : > { %s1766_s15 = smov (%p35_p0, %s34_s15), 0  ;;  %s1768_s16 = smov (!%p35_p0, %s37_s16), %s1341_s11 }
  0x10   : > { %s201_s17 = ssub.s32 %s1337_s10, %s1766_s15  ;;  %p1447_p3 = por %p216_p2, %p215_p1 }
  0x11   : > { %p39_p4 = scmp.ge.s32.totalorder %s1768_s16, 2  ;;  %p222_p6 = scmp.eq.s32.totalorder %s1043_s14, 3 }
  0x12   : > { %p1046_p7 = scmp.ge.s32.totalorder %s1345_s12, 1  ;;  %p291_p9 = scmp.lt.s32.totalorder %s1345_s12, 5 }
  0x13   : > { %s1770_s16 = smov (%p39_p4, %s1768_s16), 0  ;;  %p1456_p8 = por %p222_p6, %p221_p5 }
  0x14   : > { %s200_s20 = ssub.s32 %s1341_s11, %s1770_s16  ;;  %s205_s21 = sadd.s32 1, %s1325_s29 }
  0x15   : > { %s202_s22 = sor.u32 %s201_s17, %s200_s20  ;;  %p292_p10 = pnand %p1046_p7, %p291_p9 }
  0x16   : > { %p203_p11 = scmp.eq.s32.totalorder %s202_s22, 0  ;;  %vm370_vm0 = vcmask (!%p292_p10), 1043456   ;;  %s1749_s2 = sld [smem:[#allocation10_spill]] (!%p292_p10)  ;;  %v1347_v1 = vmov (!%p292_p10), 0.0   ;;  %vm1348_vm1 = vmmov (!%p292_p10), 0   ;;  %vm366_vm2 = vcmask (!%p292_p10), 64512  }
  0x17   : > { %295 = sbr.rel (%p292_p10) target bundleno = 369 (0x171), region = 44  ;;  %p337_p12 = scmp.lt.s32.totalorder (!%p292_p10), %s1333_s9, 1  ;;  %1095 = vmatprep.subr.bf16.mxu1 (!%p292_p10), %v1347_v1  ;;  %1097 = vmatprep.mubr.msk.bf16.mxu1 (!%p292_p10), %vm1348_vm1, %v1347_v1  ;;  %v1055_v12 = vld [vmem:[%s1738_s4] ss:$0 sm:$0xff] (!%p292_p10)  ;;  %v698_v48 = vlaneseq (!%p292_p10)  ;;  %vm685_vm3 = vcmask (!%p292_p10), 1042432   ;;  %vm714_vm5 = vcmask (!%p292_p10), 1046528  }
  0x18   : > { %s1465_s23 = scalar_select %p203_p11, %s1325_s29, %s205_s21  }
  0x19   : > { %s1474_s26 = sshll.u32 (!%p292_p10), %s1329_s30, 4  ;;  %s1750_s1 = sld [smem:[#allocation9_spill]] (!%p292_p10)  ;;  %1089 = vmatprep.subr.bf16.mxu0 (!%p292_p10), %v1347_v1  ;;  %1091 = vmatprep.mubr.msk.bf16.mxu0 (!%p292_p10), %vm1348_vm1, %v1347_v1  ;;  %v1053_v50 = vld [vmem:[%s1737_s3] ss:$0 sm:$0xff] (!%p292_p10)  ;;  %v699_v52 = vshrl.u32 (!%p292_p10), %v698_v48, 7  ;;  %vm734_vm6 = vcmask (!%p292_p10), 1045504  }
  0x1a   : > { %s1059_s20 = sadd.s32 (!%p292_p10), 4294967293, %s1474_s26  ;;  %s1751_s0 = sld [smem:[#allocation8_spill]] (!%p292_p10)  ;;  %v697_v57 = vld [vmem:[%s1739_s5] sm:$0x7f] (!%p292_p10)  ;;  %vm754_vm7 = vcmask (!%p292_p10), 1044480   ;;  %vm812_vm8 = vcmask (!%p292_p10), 1041408  }
  0x1b   : > { %p482_p13 = scmp.gt.s32.totalorder (!%p292_p10), %s1059_s20, 0  ;;  %s1491_s14 = sadd.s32 (!%p292_p10), 16, %s1474_s26  ;;  %v706_v55 = vsub.s32 (!%p292_p10), 1, %v699_v52  ;;  %v726_v58 = vsub.s32 (!%p292_p10), 2, %v699_v52  ;;  %v746_v59 = vsub.s32 (!%p292_p10), 3, %v699_v52  ;;  %v766_v62 = vsub.s32 (!%p292_p10), 4, %v699_v52 }
  0x1c   : > { %v415_v0 = vld [vmem:[%s1749_s2] sm:$0xf] (!%p292_p10)  ;;  %p583_p0 = scmp.lt.s32.totalorder (!%p292_p10), %s1491_s14, 29  ;;  %p577_p1 = scmp.gt.s32.totalorder (!%p292_p10), %s1474_s26, 0  ;;  %vm830_vm10 = vcmask (!%p292_p10), 60416   ;;  %vm842_vm11 = vcmask (!%p292_p10), 57344  }
  0x1d   : > { %v424_v2 = vsel (!%p292_p10), %vm370_vm0, %v415_v0, 0  ;;  %p678_p2 = scmp.lt.s32.totalorder (!%p292_p10), %s1491_s14, 32  ;;  %v700_v0 = vsub.s32 (!%p292_p10), 0, %v699_v52 }
  0x1e   : > { %1096 = vmatpush3.bf16.msra.mxu1 %v424_v2  ;;  %s1480_s17 = scalar_select %p337_p12, %s1333_s9, 1 }
  0x1f   : > { %v358_v3 = vld [vmem:[%s1750_s1] sm:$0xf]  ;;  %1107 = vmatprep.subr.bf16.mxu1 %v1347_v1  ;;  %s1772_s20 = smov (!%p482_p13, %s1059_s20), 0 }
  0x20   : > { %v372_v4 = vsel %vm370_vm0, %v358_v3, 0  ;;  %s1074_s21 = sshll.u32 %s1480_s17, 5 }
  0x21   : > { %1090 = vmatpush3.bf16.msra.mxu0 %v372_v4  ;;  %s341_s25 = scalar_lea.vmem %s1751_s0, %s1074_s21 }
  0x22   : > { %1101 = vmatprep.subr.bf16.mxu0 %v1347_v1  ;;  %s354_s13 = scalar_lea.vmem %s341_s25, %s1474_s26  ;;  %s484_s22 = scalar_lea.vmem %s341_s25, %s1772_s20 }
  0x23   : > { %v355_v5 = vld [vmem:[%s354_s13] sm:$0xff]  ;;  %v356_v6 = vld [vmem:[%s354_s13 + $0x8] sm:$0xff]  ;;  %s584_s21 = scalar_select %p583_p0, %s1491_s14, 29 }
  0x24   : > { %v357_v7 = vpack.c.bf16 %v356_v6, %v355_v5  ;;  %v485_v8 = vld [vmem:[%s484_s22] sm:$0x7]  ;;  %s578_s22 = scalar_select %p577_p1, 1, 0  ;;  %v804_v5 = vsub.s32 6, %v699_v52 }
  0x25   : > { %v486_v9 = vpack.c.bf16 %v485_v8, %v485_v8  ;;  %s585_s24 = scalar_lea.vmem %s341_s25, %s584_s21  ;;  %v1524_v8 = vrot.slane %v697_v57, %v746_v59  ;;  %s1049_s14 = sshll.u32 %s1329_s30, 1 }
  0x26   : > { %1098 = vmatmul.mubr.msk.bf16.vlgmr.msra.gmra.mrb[0].mxu1 %vm366_vm2, %v357_v7  ;;  %1092 = vmatmul.mubr.msk.bf16.vlgmr.msra.gmra.mrb[0].mxu0 %vm366_vm2, %v357_v7  ;;  %v586_v10 = vld [vmem:[%s585_s24] sm:$0x7]  ;;  %v1522_v7 = vrot.slane %v697_v57, %v726_v58  ;;  %s679_s26 = scalar_select %p678_p2, 1, 0 }
  0x27   : > { %1108 = vmatpush3.bf16.msra.mxu1 %v424_v2  ;;  %1109 = vmatprep.mubr.msk.bf16.mxu1 %vm1348_vm1, %v1347_v1  ;;  %v587_v11 = vpack.c.bf16 %v586_v10, %v586_v10  ;;  %p1592_p4 = scmp.lt.s32.totalorder %s1049_s14, 3  ;;  %s1050_s25 = sshll.u32 %s1480_s17, 2 }
  0x28   : > { %1119 = vmatprep.subr.bf16.mxu1 %v1347_v1  ;;  %1102 = vmatpush3.bf16.msra.mxu0 %v372_v4 }
  0x29   : > { %1103 = vmatprep.mubr.msk.bf16.mxu0 %vm1348_vm1, %v1347_v1  ;;  %1113 = vmatprep.subr.bf16.mxu0 %v1347_v1  ;;  %s1774_s14 = smov (!%p1592_p4, %s1049_s14), 3 }
  0x2a   : > { %s348_s21 = sadd.s32 %s1050_s25, %s1774_s14  ;;  %s1068_s14 = sshll.u32 %s1333_s9, 1 }
  0x2b   : > { %s1051_s17 = sshll.u32 %s348_s21, 2  ;;  %s884_s13 = sadd.s32 %s1329_s30, %s1068_s14 }
  0x2c   : > { %s350_s20 = scalar_lea.vmem %s1740_s6, %s1051_s17  ;;  %s1069_s25 = sshll.u32 %s884_s13, 4 }
  0x2d   : > { %s1647_s0 = scalar_lea.hbm %s1741_s7, %s1069_s25  ;;  %s1655_s13 = scalar_lea.hbm %s1742_s8, %s1069_s25 }
  0x2e   : > { %1110 = vmatmul.mubr.msk.bf16.vlgmr.msra.gmra.mrb[4].mxu1 %vm366_vm2, %v486_v9  ;;  %1104 = vmatmul.mubr.msk.bf16.vlgmr.msra.gmra.mrb[4].mxu0 %vm366_vm2, %v486_v9  ;;  %v579_v9 = vstv %s578_s22 }
  0x2f   : > { %1120 = vmatpush3.bf16.msra.mxu1 %v424_v2  ;;  %1121 = vmatprep.mubr.msk.bf16.mxu1 %vm1348_vm1, %v1347_v1  ;;  %vm1540_vm4 = vcmp.eq.s32.totalorder %v579_v9, 1 }
  0x30   : > { %1114 = vmatpush3.bf16.msra.mxu0 %v372_v4  ;;  %1115 = vmatprep.mubr.msk.bf16.mxu0 %vm1348_vm1, %v1347_v1  ;;  %v785_v1 = vsub.s32 5, %v699_v52  ;;  %v1520_v4 = vrot.slane %v697_v57, %v706_v55 }
  0x36   : > { %1122 = vmatmul.mubr.msk.bf16.vlgmr.msra.gmra.mrb[8].mxu1 %vm366_vm2, %v587_v11  ;;  %1116 = vmatmul.mubr.msk.bf16.vlgmr.msra.gmra.mrb[8].mxu0 %vm366_vm2, %v587_v11 }
  0xf9   : > { %v460_v13 = vpop.f32.mrb[0].mxu1  ;;  %v408_v14 = vpop.f32.mrb[0].mxu0 }
  0xfa   : > { %v461_v15 = vadd.f32 %v1055_v12, %v460_v13  ;;  %v1099_v16 = vpop.f32.mrb[1].mxu1  ;;  %v1093_v17 = vpop.f32.mrb[1].mxu0  ;;  %v409_v54 = vadd.f32 %v1053_v50, %v408_v14  ;;  %v1531_v14 = vrot.slane %v697_v57, %v785_v1 }
  0xfb   : > { %v463_v18 = vpop.f32.mrb[2].mxu1  ;;  %v411_v19 = vpop.f32.mrb[2].mxu0  ;;  %v1538_v16 = vrot.slane %v697_v57, %v804_v5 }
  0xfc   : > { %v1057_v20 = vmul.f32 -1.442695, %v461_v15  ;;  %v464_v21 = vadd.f32 %v1055_v12, %v463_v18  ;;  %v1100_v22 = vpop.f32.mrb[3].mxu1  ;;  %v1094_v23 = vpop.f32.mrb[3].mxu0  ;;  %v412_v61 = vadd.f32 %v1053_v50, %v411_v19 }
  0xfd   : > { %v680_v22 = vstv %s679_s26  ;;  %v1556_v23 = vrot.slane %v697_v57, %v700_v0  ;;  %s1636_s26 = sand.u32 1, %s1321_s28  }
  0xfe   : > { %1203 = vpow2.f32 %v1057_v20  ;;  %v1058_v24 = vmul.f32 -1.442695, %v464_v21  ;;  %vm1573_vm9 = vcmp.eq.s32.totalorder %v680_v22, 1  ;;  %s330_s21 = scalar_lea.vmem [#allocation2], %s1636_s26  ;;  %s1743_s22 = scalar_lea.vmem [#allocation4], %s1636_s26 }
  0xff   : > { %s888_s17 = sshll.u32 %s330_s21, 4  ;;  %s903_s24 = sshll.u32 %s1743_s22, 4  ;;  %s1649_s17 = int_to_ptr.vmem [resolvable:$true] %s888_s17  ;;  %s1657_s24 = int_to_ptr.vmem [resolvable:$true] %s903_s24 }
 0x100   : > { %1205 = vpow2.f32 %v1058_v24  ;;  %s866_s22 = scalar_lea.sflag [#allocation3], %s1636_s26  ;;  %s1219_s9 = scalar_lea.vmem %s1649_s17, 16 }
 0x101   : > { %v564_v25 = vpop.f32.mrb[4].mxu1  ;;  %v524_v26 = vpop.f32.mrb[4].mxu0  ;;  %p1220_p5 = scmp.ne.s32.totalorder %s1649_s17, %s1219_s9 }
 0x102   : > { %v565_v27 = vadd.f32 %v1055_v12, %v564_v25  ;;  %v1111_v28 = vpop.f32.mrb[5].mxu1  ;;  %v1105_v29 = vpop.f32.mrb[5].mxu0  ;;  %v525_v13 = vadd.f32 %v1053_v50, %v524_v26 }
 0x103   : > { %v567_v30 = vpop.f32.mrb[6].mxu1  ;;  %v527_v31 = vpop.f32.mrb[6].mxu0  ;;  %p1221_p6 = pnand %p1220_p5, %p1447_p3 }
 0x104   : > { %v1062_v32 = vmul.f32 -1.442695, %v565_v27  ;;  %v1112_v33 = vpop.f32.mrb[7].mxu1  ;;  %v1106_v34 = vpop.f32.mrb[7].mxu0 }
 0x105   : > { %p1222_p7 = pneg %p1221_p6 }
 0x106   : > { %1207 = vpow2.f32 %v1062_v32 }
 0x108   : > { %v1204_v35 = vpop.eup %1203 }
 0x109   : > { %v473_v36 = vadd.f32 1.0, %v1204_v35  ;;  %v665_v37 = vpop.f32.mrb[8].mxu1  ;;  %v1508_v38 = vpop.f32.mrb[8].mxu0 }
 0x10a   : > { %v1206_v39 = vpop.eup %1205  ;;  %v666_v40 = vadd.f32 %v1055_v12, %v665_v37  ;;  %v1123_v41 = vpop.f32.mrb[9].mxu1  ;;  %v1529_v12 = vrot.slane %v697_v57, %v766_v62  ;;  %v626_v29 = vadd.f32 %v1053_v50, %v1508_v38 }
 0x10b   : > { %v1117_v42 = vpop.f32.mrb[9].mxu0  ;;  %1209 = vrcp.f32 %v473_v36  ;;  %v474_v43 = vadd.f32 1.0, %v1206_v39  ;;  %v668_v44 = vpop.f32.mrb[10].mxu1 }
 0x10c   : > { %v628_v45 = vpop.f32.mrb[10].mxu0  ;;  %v1065_v46 = vmul.f32 -1.442695, %v666_v40  ;;  %v1124_v47 = vpop.f32.mrb[11].mxu1 }
 0x10d   : > { %v1118_v49 = vpop.f32.mrb[11].mxu0  ;;  %1211 = vrcp.f32 %v474_v43 }
 0x10e   : > { %1213 = vpow2.f32 %v1065_v46 }
 0x110   : > { %v1208_v51 = vpop.eup %1207 }
 0x111   : > { %v573_v53 = vadd.f32 1.0, %v1208_v51 }
 0x113   : > { %1215 = vrcp.f32 %v573_v53 }
 0x115   : > { %v1210_v56 = vpop.eup %1209 }
 0x116   : > { %v479_v60 = vmul.f32 %v1210_v56, %v409_v54 }
 0x117   : > { %v1212_v63 = vpop.eup %1211 }
 0x118   : > { %v1214_v2 = vpop.eup %1213  ;;  %v1518_v3 = vmul.f32 %v1212_v63, %v412_v61  ;;  %v686_v10 = vrot.slane %v479_v60, 5 }
 0x119   : > { %v674_v6 = vadd.f32 1.0, %v1214_v2 }
 0x11a   : > { %v687_v11 = vrot.slane %v1518_v3, 5 }
 0x11b   : > { %1217 = vrcp.f32 %v674_v6 }
 0x11c   : > { %v1536_v15 = vsel %vm685_vm3, %v686_v10, %v687_v11 }
 0x11d   : > { %v1216_v18 = vpop.eup %1215  ;;  %v1546_v19 = vmul.f32 %v1520_v4, %v1536_v15  ;;  %v1550_v20 = vmul.f32 %v1522_v7, %v1536_v15  ;;  %v1554_v21 = vmul.f32 %v1524_v8, %v1536_v15  ;;  %v1560_v24 = vmul.f32 %v1529_v12, %v1536_v15 }
 0x11e   : > { %v576_v25 = vmul.f32 %v1216_v18, %v525_v13  ;;  %v1564_v26 = vmul.f32 %v1531_v14, %v1536_v15  ;;  %v1568_v27 = vmul.f32 %v1538_v16, %v1536_v15 }
 0x11f   : > { %v716_v31 = vrot.slane %v1546_v19, 1  ;;  %v736_v32 = vrot.slane %v1550_v20, 2  ;;  %v756_v33 = vrot.slane %v1554_v21, 3  ;;  %v775_v35 = vrot.slane %v1560_v24, 4 }
 0x120   : > { %v581_v28 = vsel %vm1540_vm4, %v576_v25, 0.0  ;;  %v794_v39 = vrot.slane %v1564_v26, 5  ;;  %v814_v43 = vrot.slane %v1568_v27, 6 }
 0x121   : > { %v695_v34 = vsel %vm685_vm3, %v581_v28, %v686_v10 }
 0x122   : > { %v708_v36 = vmul.f32 %v1520_v4, %v695_v34  ;;  %v728_v37 = vmul.f32 %v1522_v7, %v695_v34  ;;  %v748_v38 = vmul.f32 %v1524_v8, %v695_v34  ;;  %v768_v40 = vmul.f32 %v1529_v12, %v695_v34 }
 0x123   : > { %v787_v41 = vmul.f32 %v1531_v14, %v695_v34  ;;  %v806_v42 = vmul.f32 %v1538_v16, %v695_v34  ;;  %v702_v48 = vmul.f32 %v1556_v23, %v695_v34 }
 0x124   : > { %v715_v44 = vrot.slane %v708_v36, 1  ;;  %v735_v45 = vrot.slane %v728_v37, 2  ;;  %v755_v46 = vrot.slane %v748_v38, 3  ;;  %v774_v49 = vrot.slane %v768_v40, 4 }
 0x125   : > { %v1218_v47 = vpop.eup %1217  ;;  %v793_v50 = vrot.slane %v787_v41, 5  ;;  %v813_v51 = vrot.slane %v806_v42, 6 }
 0x126   : > { %v717_v52 = vsel %vm714_vm5, %v715_v44, %v716_v31  ;;  %v737_v53 = vsel %vm734_vm6, %v735_v45, %v736_v32  ;;  %v757_v54 = vsel %vm754_vm7, %v755_v46, %v756_v33  ;;  %v677_v55 = vmul.f32 %v1218_v47, %v626_v29 }
 0x127   : > { %v722_v56 = vadd.f32 %v717_v52, %v702_v48  ;;  %v776_v57 = vsel %vm370_vm0, %v774_v49, %v775_v35  ;;  %v795_v58 = vsel %vm685_vm3, %v793_v50, %v794_v39  ;;  %v815_v59 = vsel %vm812_vm8, %v813_v51, %v814_v43 }
 0x128   : > { %v682_v60 = vsel %vm1573_vm9, %v677_v55, 0.0 }
 0x129   : > { %v742_v61 = vadd.f32 %v737_v53, %v722_v56  ;;  %v693_v62 = vrot.slane %v682_v60, 5 }
 0x12b   : > { %v762_v63 = vadd.f32 %v757_v54, %v742_v61  ;;  %v696_v0 = vsel %vm685_vm3, %v687_v11, %v693_v62  ;;  %v703_v11 = vmul.f32 %v1556_v23, %v1536_v15 }
 0x12c   : > { %v710_v1 = vmul.f32 %v1520_v4, %v696_v0  ;;  %v730_v2 = vmul.f32 %v1522_v7, %v696_v0  ;;  %v750_v5 = vmul.f32 %v1524_v8, %v696_v0  ;;  %v770_v6 = vmul.f32 %v1529_v12, %v696_v0 }
 0x12d   : > { %v789_v9 = vmul.f32 %v1531_v14, %v696_v0  ;;  %v808_v10 = vmul.f32 %v1538_v16, %v696_v0  ;;  %v781_v13 = vadd.f32 %v776_v57, %v762_v63 }
 0x12e   : > { %v718_v17 = vrot.slane %v710_v1, 1  ;;  %v738_v18 = vrot.slane %v730_v2, 2  ;;  %v758_v19 = vrot.slane %v750_v5, 3  ;;  %v777_v3 = vrot.slane %v770_v6, 4 }
 0x12f   : > { %v796_v4 = vrot.slane %v789_v9, 5  ;;  %v816_v20 = vrot.slane %v808_v10, 6  ;;  %v800_v7 = vadd.f32 %v795_v58, %v781_v13 }
 0x130   : > { %v719_v8 = vsel %vm714_vm5, %v716_v31, %v718_v17  ;;  %v739_v12 = vsel %vm734_vm6, %v736_v32, %v738_v18  ;;  %v759_v14 = vsel %vm754_vm7, %v756_v33, %v758_v19  ;;  %v778_v16 = vsel %vm370_vm0, %v775_v35, %v777_v3 }
 0x131   : > { %v723_v21 = vadd.f32 %v719_v8, %v703_v11  ;;  %v797_v22 = vsel %vm685_vm3, %v794_v39, %v796_v4  ;;  %v817_v24 = vsel %vm812_vm8, %v814_v43, %v816_v20  ;;  %v820_v25 = vadd.f32 %v815_v59, %v800_v7 }
 0x133   : > { %v743_v15 = vadd.f32 %v739_v12, %v723_v21  ;;  %v1075_v23 = vpack.c.bf16 %v820_v25, %v820_v25  ;;  %v844_v30 = vmul.f32 %v820_v25, %v820_v25  ;;  %v833_v32 = vsel %vm366_vm2, %v820_v25, 0.0 }
 0x135   : > { %v763_v26 = vadd.f32 %v759_v14, %v743_v15  ;;  %831 = vst.msk [vmem:[%s350_s20] sm:$0xf] %vm830_vm10, %v1075_v23  ;;  %v846_v36 = vsel %vm366_vm2, %v844_v30, 0.0 }
 0x137   : > { %v782_v27 = vadd.f32 %v778_v16, %v763_v26 }
 0x139   : > { %v801_v28 = vadd.f32 %v797_v22, %v782_v27 }
 0x13b   : > { %v821_v29 = vadd.f32 %v817_v24, %v801_v28 }
 0x13d   : > { %v1076_v31 = vpack.c.bf16 %v821_v29, %v821_v29  ;;  %v834_v33 = vsel %vm366_vm2, %v821_v29, 0.0  ;;  %v845_v34 = vmul.f32 %v821_v29, %v821_v29 }
 0x13e   : > { %v835_v35 = vadd.f32 %v834_v33, %v833_v32 }
 0x13f   : > { %832 = vst.msk [vmem:[%s350_s20 + $0x4] sm:$0xf] %vm830_vm10, %v1076_v31  ;;  %v847_v37 = vsel %vm366_vm2, %v845_v34, 0.0  ;;  %s1349_s20 = smov [#allocation2]  }
 0x140   : > { %v836_v38 = vrot.slane %v835_v35, 4  ;;  %v848_v39 = vadd.f32 %v847_v37, %v846_v36  ;;  %s1223_s1 = sshll.u32 %s1349_s20, 4  ;;  %s1224_s1 = int_to_ptr.vmem [resolvable:$false] %s1223_s1 }
 0x141   : > { %s1225_s2 = scalar_lea.vmem %s1224_s1, 32  ;;  %p1226_p9 = scmp.lt.s32.totalorder %s1649_s17, %s1224_s1 }
 0x142   : > { %v837_v40 = vadd.f32 %v836_v38, %v835_v35  ;;  %v849_v41 = vrot.slane %v848_v39, 4  ;;  %p1227_p10 = scmp.lt.s32.totalorder %s1225_s2, %s1219_s9 }
 0x144   : > { %v838_v42 = vrot.slane %v837_v40, 2  ;;  %v850_v43 = vadd.f32 %v849_v41, %v848_v39  ;;  %p1228_p11 = por %p1227_p10, %p1226_p9 }
 0x146   : > { %v839_v44 = vadd.f32 %v838_v42, %v837_v40  ;;  %v851_v45 = vrot.slane %v850_v43, 2  ;;  %p1229_p12 = pnand %p1228_p11, %p1222_p7 }
 0x148   : > { %v840_v46 = vrot.slane %v839_v44, 1  ;;  %v852_v47 = vadd.f32 %v851_v45, %v850_v43 }
 0x14a   : > { %v841_v48 = vadd.f32 %v840_v46, %v839_v44  ;;  %v853_v49 = vrot.slane %v852_v47, 1 }
 0x14c   : > { %843 = vst.msk [vmem:[%s330_s21] sm:$0x1] %vm842_vm11, %v841_v48  ;;  %v854_v50 = vadd.f32 %v853_v49, %v852_v47 }
 0x14d   : > { %1232 = shalt.err (!%p1229_p12)
}
 0x14e   : > { %s1233_s25 = scalar_lea.hbm %s1647_s0, 16  ;;  %s1237_s14 = scalar_lea.hbm %s1741_s7, 64 }
 0x14f   : > { %p1234_p13 = scmp.ne.s32.totalorder %s1647_s0, %s1233_s25  ;;  %p1238_p2 = scmp.lt.u32.totalorder %s1647_s0, %s1741_s7 }
 0x150   : > { %p1239_p4 = scmp.lt.u32.totalorder %s1237_s14, %s1233_s25  ;;  %p1241_p6 = scmp.lt.u32.totalorder %s1233_s25, %s1647_s0 }
 0x151   : > { %p1235_p0 = pnand %p1234_p13, %p1447_p3 }
 0x152   : > { %p1240_p5 = por %p1239_p4, %p1238_p2 }
 0x153   : > { %p1236_p1 = pneg %p1235_p0 }
 0x154   : > { %p1242_p7 = por %p1241_p6, %p1240_p5 }
 0x156   : > { %p1243_p9 = pnand %p1242_p7, %p1236_p1 }
 0x158   : > { %1246 = shalt.err (!%p1243_p9)
}
 0x159   : > { %1125 = dma.vmem_to_hbm [thread:$0]  (%p1447_p3), %s1649_s17, 16, %s1647_s0, %s866_s22  }
 0x15a   : > { %s1757_s2 = scalar_lea.vmem [#allocation4], %s1636_s26  ;;  %s870_s9 = scalar_lea.sflag [#allocation5], %s1636_s26 }
 0x15b   : > { %855 = vst.msk [vmem:[%s1757_s2] sm:$0x1] %vm842_vm11, %v854_v50  ;;  %s1247_s21 = scalar_lea.vmem %s1657_s24, 16  ;;  %s1350_s25 = smov [#allocation4]  }
 0x15c   : > { %p1248_p10 = scmp.ne.s32.totalorder %s1657_s24, %s1247_s21  ;;  %s1251_s30 = sshll.u32 %s1350_s25, 4  ;;  %s1252_s30 = int_to_ptr.vmem [resolvable:$false] %s1251_s30 }
 0x15d   : > { %s1253_s14 = scalar_lea.vmem %s1252_s30, 32  ;;  %p1254_p13 = scmp.lt.s32.totalorder %s1657_s24, %s1252_s30 }
 0x15e   : > { %p1249_p11 = pnand %p1248_p10, %p1447_p3  ;;  %p1255_p0 = scmp.lt.s32.totalorder %s1253_s14, %s1247_s21 }
 0x160   : > { %p1250_p12 = pneg %p1249_p11  ;;  %p1256_p1 = por %p1255_p0, %p1254_p13 }
 0x162   : > { %p1257_p2 = pnand %p1256_p1, %p1250_p12 }
 0x164   : > { %1260 = shalt.err (!%p1257_p2)
}
 0x165   : > { %s1261_s0 = scalar_lea.hbm %s1655_s13, 16  ;;  %s1265_s22 = scalar_lea.hbm %s1742_s8, 64 }
 0x166   : > { %p1262_p4 = scmp.ne.s32.totalorder %s1655_s13, %s1261_s0  ;;  %p1266_p7 = scmp.lt.u32.totalorder %s1655_s13, %s1742_s8 }
 0x167   : > { %p1267_p9 = scmp.lt.u32.totalorder %s1265_s22, %s1261_s0  ;;  %p1269_p11 = scmp.lt.u32.totalorder %s1261_s0, %s1655_s13 }
 0x168   : > { %p1263_p5 = pnand %p1262_p4, %p1447_p3 }
 0x169   : > { %p1268_p10 = por %p1267_p9, %p1266_p7 }
 0x16a   : > { %p1264_p6 = pneg %p1263_p5 }
 0x16b   : > { %p1270_p12 = por %p1269_p11, %p1268_p10 }
 0x16d   : > { %p1271_p13 = pnand %p1270_p12, %p1264_p6 }
 0x16f   : > { %1274 = shalt.err (!%p1271_p13)
}
 0x170   : > { %1126 = dma.vmem_to_hbm [thread:$0]  (%p1447_p3), %s1657_s24, 16, %s1655_s13, %s870_s9  }
 0x171 PF: > { %p1136_p0 = scmp.ge.s32.totalorder %s1345_s12, 2  ;;  %s927_s2 = sand.u32 1, %s1317_s27  }
 0x172   : > { %s928_s21 = scalar_lea.sflag [#allocation3], %s927_s2 }
 0x173   : > { %p1130_p1 = pnand %p1136_p0, %p1456_p8 }
 0x175   : > { %1308 = dma.done.wait (!%p1130_p1), %s928_s21, 16  }
 0x176   : > { %1310 = vsyncadd (!%p1130_p1), %s928_s21, 4294967280  ;;  %s936_s25 = scalar_lea.sflag [#allocation5], %s927_s2 }
 0x177   : > { %1312 = dma.done.wait (!%p1130_p1), %s936_s25, 16  }
 0x178   : > { %1314 = vsyncadd (!%p1130_p1), %s936_s25, 4294967280  ;;  %s25_s12 = sadd.s32 1, %s1345_s12   ;;  %s1758_s27 = smov %s1321_s28 }
 0x179   : > { %p22_p2 = scmp.ge.s32.totalorder %s25_s12, 6   ;;  %s1759_s28 = smov %s1325_s29 }
 0x17a   : > { %s1760_s29 = smov %s1465_s23  ;;  %s1761_s30 = smov %s1337_s10 }
 0x17b   : > { %s1762_s9 = smov %s1341_s11  ;;  %s1763_s10 = smov %s1766_s15 }
 0x17c   : > { %s1764_s11 = smov %s1770_s16  ;;  %24 = sbr.rel (!%p22_p2) target bundleno = 11 (0xb), region = 111 }
 0x183   :  { %940 = vsyncpa [#allocation3], 1 }
 0x184   :  { %942 = vsyncpa [#allocation3 + $0x1], 1 }
 0x185   :  { %943 = vsyncpa [#allocation5], 1 }
 0x186   :  { %945 = vsyncpa [#allocation5 + $0x1], 1 }

</bundles_post_ra>
